<compile_context>
chip_gen: v7x
topology: tpu7x:2x2x1
jax: 0.10.0
libtpu: 0.0.40
codegen_flags: <defaults>
</compile_context>

<pallas_src>
import jax
import jax.numpy as jnp
import numpy as np
from jax.experimental import pallas as pl
from jax.experimental.pallas import tpu as pltpu


# ------------------------------ fused kernel --------------------------------

def _make_fused_aux_kernel(tau):
    tau = float(tau)

    def kernel(x_ref, afull_ref, pool_ref, const_ref, g0_ref, g1_ref,
               maskt_ref, alpha_ref, out_ref):
        x = x_ref[...]                                   # [B, L, 2H] — read once, reused

        # ---- linear1 -> view([-1, C, L]) -> linear2, exactly folded ----
        # y[b, m]   = <x[b, m, :], A[m % R, :]>           (A folded on host from W1, w2)
        # lin2[b,c] = sum_{m // R == c} y[b, m] + const   (group-sum via tiny pooling dot)
        y = jnp.sum(x * afull_ref[...], axis=2)          # [B, L]   VPU mul + lane reduce
        lin2 = (jnp.dot(y, pool_ref[...], preferred_element_type=jnp.float32)
                + const_ref[...])                        # [B, C]

        # ---- sigmoid + soft gumbel-softmax over the two classes {1-p, p} ----
        p = pl.reciprocal(1.0 + jnp.exp(-lin2), approx=False)        # sigmoid (EUP exp)
        a0 = (1.0 - p + g0_ref[...]) / tau
        a1 = (p + g1_ref[...]) / tau
        m = jnp.maximum(a0, a1)
        e0 = jnp.exp(a0 - m)
        e1 = jnp.exp(a1 - m)
        g_t = e1 * pl.reciprocal(e0 + e1, approx=False)  # [B, C]

        # ---- exact batch-sum hoist: sum over the broadcast batch dim of g_t ----
        g_sum = jnp.sum(g_t, axis=0, keepdims=True)      # [1, C]

        maskt = maskt_ref[...]                           # [B, L, C] (lane-friendly layout)
        gmask = jnp.sum(maskt * g_sum[:, None, :], axis=2)   # [B, L]
        attn = gmask * alpha_ref[...]                    # [B, L]
        acc = jnp.sum(attn[:, :, None] * x, axis=1)      # [B, 2H]  (the torch bmm + row-sum)

        # ---- mask-only count, vectorized once ----
        seg_len = jnp.sum(maskt, axis=1)                 # [B, C]
        cnt = jnp.sum(jnp.where(seg_len > 1.0, 1.0, 0.0),
                      axis=1, keepdims=True)             # [B, 1]
        # NOTE: cnt == 0 yields inf, identical to the PyTorch module (no clamp).

        out_ref[...] = acc * pl.reciprocal(cnt, approx=False)   # one dense [B, 2H] store

    return kernel


# -------------------------------- wrapper ------------------------------------

def auxiliary_net_forward(params, lstm_hidden, alpha, mask, gumbel_noise, tau=1.0):
    W1 = params["W1"].astype(jnp.float32)     # [C, 2H]  nn.Linear(2H, C).weight
    b1 = params["b1"].astype(jnp.float32)     # [C]
    w2 = params["w2"].astype(jnp.float32)     # [1, L]   nn.Linear(L, 1).weight
    b2 = params["b2"].astype(jnp.float32)     # [1]

    B, L, H2 = lstm_hidden.shape
    C = W1.shape[0]
    assert L % C == 0, "exact linear1->view->linear2 fold assumes max_length % cut_length == 0"
    R = L // C

    # ---- host-side, parameter-only exact fold of linear1 -> view -> linear2 ----
    # torch: lin1 = x @ W1^T + b1 ; view([-1, C, L]) (raw row-major reinterpret);
    #        lin2 = view @ w2^T + b2.
    # view[b, c, l] = lin1[b, (c*L + l)//C, (c*L + l)%C]  with l = r*C + j  =>
    #   lin2[b, c] = sum_{r<R} < x[b, c*R + r, :], A[r, :] > + const
    w2m = w2.reshape(R, C)                               # w2[r*C + j] -> w2m[r, j]
    A = jnp.dot(w2m, W1)                                 # [R, 2H]
    a_full = jnp.tile(A, (C, 1))                         # [L, 2H]; row m uses A[m % R]
    const = (jnp.sum(jnp.dot(w2m, b1)) + b2[0]).reshape(1, 1)
    # contiguous group-sum (groups of R along L) as a tiny [L, C] pooling matrix
    pool = (jnp.arange(L)[:, None] // R ==
            jnp.arange(C)[None, :]).astype(jnp.float32)  # [L, C]

    # layout plumbing (host): lane-friendly mask transpose and split gumbel noise
    mask_t = jnp.transpose(mask, (0, 2, 1)).astype(jnp.float32)   # [B, L, C]
    g0 = gumbel_noise[..., 0].astype(jnp.float32)        # [B, C] noise for class 0 (= 1 - p)
    g1 = gumbel_noise[..., 1].astype(jnp.float32)        # [B, C] noise for class 1 (= p)

    vmem = pl.BlockSpec(memory_space=pltpu.MemorySpace.VMEM)

    # Single fused pallas_call: lstm_hidden is DMA'd HBM->VMEM exactly once and
    # no intermediate ever touches HBM.  At production shapes, add a grid over
    # B ("parallel") and L ("arbitrary") with per-generation tiles instead of
    # whole-array residency (v7x: 64 MiB VMEM, 2 TensorCores).
    out = pl.pallas_call(
        _make_fused_aux_kernel(tau),
        out_shape=jax.ShapeDtypeStruct((B, H2), jnp.float32),
        in_specs=[vmem] * 8,
        out_specs=vmem,
    )(lstm_hidden.astype(jnp.float32), a_full, pool, const,
      g0, g1, mask_t, alpha.astype(jnp.float32))
    return out


# --------------------------- pure-JAX reference ------------------------------

def _reference(params, lstm_hidden, alpha, mask, gumbel_noise, tau=1.0):
    W1, b1, w2, b2 = params["W1"], params["b1"], params["w2"], params["b2"]
    B, L, H2 = lstm_hidden.shape
    C = W1.shape[0]
    lin1 = jnp.einsum("blh,kh->blk", lstm_hidden, W1) + b1              # [B, L, C]
    resh = lin1.reshape(B, C, L)                                        # torch .view
    lin2 = jnp.einsum("bkl,l->bk", resh, w2.reshape(-1))[..., None] + b2[0]
    p = jax.nn.sigmoid(lin2)                                            # [B, C, 1]
    p_t = jnp.concatenate([1.0 - p, p], axis=-1)                        # [B, C, 2]
    y = jax.nn.softmax((p_t + gumbel_noise) / tau, axis=-1)
    g_t = y[..., 1]                                                     # [B, C]
    alpha_permute = alpha[:, None, :]                                   # [B, 1, L]
    g_t_mask = jnp.einsum("jc,icl->ijl", g_t, mask)                     # [B, B, L]
    attn = g_t_mask * alpha_permute
    out_h = jnp.einsum("ijl,ilh->ijh", attn, lstm_hidden)               # [B, B, 2H]
    sum_hidden = out_h.sum(axis=1)
    mask_sum2 = (mask.sum(axis=2) > 1.0).astype(jnp.float32).sum(axis=1)
    return sum_hidden / mask_sum2[:, None]


# --------------------------------- main --------------------------------------

if __name__ == "__main__":
    hidden_dim, cut_length, max_length, tau = 16, 4, 8, 1.0
    B, H2, C, L = 2, 2 * hidden_dim, cut_length, max_length

    key = jax.random.PRNGKey(0)
    k1, k2, k3, k4, k5, k6, k7 = jax.random.split(key, 7)

    # Deterministic synthetic parameters (shapes from AuxiliaryNet.__init__).
    params = {
        "W1": jax.random.uniform(k1, (C, H2), jnp.float32, -0.1, 0.1),  # Linear(2H, C)
        "b1": jax.random.uniform(k2, (C,), jnp.float32, -0.1, 0.1),
        "w2": jax.random.uniform(k3, (1, L), jnp.float32, -0.3, 0.3),   # Linear(L, 1)
        "b2": jax.random.uniform(k4, (1,), jnp.float32, -0.3, 0.3),
    }

    lstm_hidden = jax.random.normal(k5, (B, L, H2), jnp.float32)
    alpha = jax.random.uniform(k6, (B, L), jnp.float32)
    lengths = jnp.array([[8, 5, 3, 1], [7, 6, 2, 4]], dtype=jnp.int32)
    mask = (jnp.arange(L)[None, None, :] < lengths[:, :, None]).astype(jnp.float32)

    # Standard Gumbel noise (torch F.gumbel_softmax samples -log(Exp(1)) noise);
    # sampled with a fixed key so the run is deterministic.
    gumbel_noise = jax.random.gumbel(k7, (B, C, 2), dtype=jnp.float32)

    out = auxiliary_net_forward(params, lstm_hidden, alpha, mask, gumbel_noise, tau)
    out = jax.block_until_ready(out)

    ref = _reference(params, lstm_hidden, alpha, mask, gumbel_noise, tau)
    np.testing.assert_allclose(np.asarray(out), np.asarray(ref), rtol=1e-4, atol=1e-4)

    print("KERNEL_OK")
</pallas_src>

<mosaic_0001>
module attributes {stable_mosaic.version = 11 : i64} {
  func.func @kernel(%arg0: memref<2x8x32xf32, #tpu.memory_space<vmem>>, %arg1: memref<8x32xf32, #tpu.memory_space<vmem>>, %arg2: memref<8x4xf32, #tpu.memory_space<vmem>>, %arg3: memref<1x1xf32, #tpu.memory_space<vmem>>, %arg4: memref<2x4xf32, #tpu.memory_space<vmem>>, %arg5: memref<2x4xf32, #tpu.memory_space<vmem>>, %arg6: memref<2x8x4xf32, #tpu.memory_space<vmem>>, %arg7: memref<2x8xf32, #tpu.memory_space<vmem>>, %arg8: memref<2x32xf32, #tpu.memory_space<vmem>>) attributes {dimension_semantics = [], scalar_prefetch = 0 : i64, scratch_operands = 0 : i64, tpu.core_type = #tpu.core_type<tc>} {
    %c0 = arith.constant 0 : index
    %c0_0 = arith.constant 0 : index
    %c0_1 = arith.constant 0 : index
    %0 = vector.load %arg0[%c0, %c0_0, %c0_1] : memref<2x8x32xf32, #tpu.memory_space<vmem>>, vector<2x8x32xf32>
    %c0_2 = arith.constant 0 : index
    %c0_3 = arith.constant 0 : index
    %1 = vector.load %arg1[%c0_2, %c0_3] : memref<8x32xf32, #tpu.memory_space<vmem>>, vector<8x32xf32>
    %2 = vector.shape_cast %1 : vector<8x32xf32> to vector<1x8x32xf32>
    %3 = vector.broadcast %2 : vector<1x8x32xf32> to vector<2x8x32xf32>
    %4 = arith.mulf %0, %3 : vector<2x8x32xf32>
    %cst = arith.constant dense<0.000000e+00> : vector<2x8xf32>
    %5 = vector.multi_reduction <add>, %4, %cst [2] : vector<2x8x32xf32> to vector<2x8xf32>
    %c0_4 = arith.constant 0 : index
    %c0_5 = arith.constant 0 : index
    %6 = vector.load %arg2[%c0_4, %c0_5] : memref<8x4xf32, #tpu.memory_space<vmem>>, vector<8x4xf32>
    %cst_6 = arith.constant dense<0.000000e+00> : vector<2x4xf32>
    %7 = tpu.matmul %5, %6, %cst_6 {dimension_numbers = #tpu.dot_dimension_numbers<[1], [0], [0], [1], [0, 0, 1, 1], [], []>} : vector<2x8xf32>, vector<8x4xf32>, vector<2x4xf32> -> vector<2x4xf32>
    %c0_7 = arith.constant 0 : index
    %c0_8 = arith.constant 0 : index
    %8 = vector.load %arg3[%c0_7, %c0_8] : memref<1x1xf32, #tpu.memory_space<vmem>>, vector<1x1xf32>
    %9 = vector.broadcast %8 : vector<1x1xf32> to vector<2x4xf32>
    %10 = arith.addf %7, %9 : vector<2x4xf32>
    %cst_9 = arith.constant 0.000000e+00 : f32
    %11 = vector.broadcast %cst_9 : f32 to vector<2x4xf32>
    %12 = arith.subf %11, %10 : vector<2x4xf32>
    %13 = math.exp %12 : vector<2x4xf32>
    %cst_10 = arith.constant 1.000000e+00 : f32
    %14 = vector.broadcast %cst_10 : f32 to vector<2x4xf32>
    %15 = arith.addf %14, %13 : vector<2x4xf32>
    %16 = tpu.reciprocal %15 : vector<2x4xf32> -> vector<2x4xf32>
    %cst_11 = arith.constant 1.000000e+00 : f32
    %17 = vector.broadcast %cst_11 : f32 to vector<2x4xf32>
    %18 = arith.subf %17, %16 : vector<2x4xf32>
    %c0_12 = arith.constant 0 : index
    %c0_13 = arith.constant 0 : index
    %19 = vector.load %arg4[%c0_12, %c0_13] : memref<2x4xf32, #tpu.memory_space<vmem>>, vector<2x4xf32>
    %20 = arith.addf %18, %19 : vector<2x4xf32>
    %cst_14 = arith.constant 1.000000e+00 : f32
    %21 = vector.broadcast %cst_14 : f32 to vector<2x4xf32>
    %22 = arith.divf %20, %21 : vector<2x4xf32>
    %c0_15 = arith.constant 0 : index
    %c0_16 = arith.constant 0 : index
    %23 = vector.load %arg5[%c0_15, %c0_16] : memref<2x4xf32, #tpu.memory_space<vmem>>, vector<2x4xf32>
    %24 = arith.addf %16, %23 : vector<2x4xf32>
    %cst_17 = arith.constant 1.000000e+00 : f32
    %25 = vector.broadcast %cst_17 : f32 to vector<2x4xf32>
    %26 = arith.divf %24, %25 : vector<2x4xf32>
    %27 = arith.maximumf %22, %26 : vector<2x4xf32>
    %28 = arith.subf %22, %27 : vector<2x4xf32>
    %29 = math.exp %28 : vector<2x4xf32>
    %30 = arith.subf %26, %27 : vector<2x4xf32>
    %31 = math.exp %30 : vector<2x4xf32>
    %32 = arith.addf %29, %31 : vector<2x4xf32>
    %33 = tpu.reciprocal %32 : vector<2x4xf32> -> vector<2x4xf32>
    %34 = arith.mulf %31, %33 : vector<2x4xf32>
    %cst_18 = arith.constant dense<0.000000e+00> : vector<4xf32>
    %35 = vector.multi_reduction <add>, %34, %cst_18 [0] : vector<2x4xf32> to vector<4xf32>
    %36 = vector.shape_cast %35 : vector<4xf32> to vector<1x4xf32>
    %c0_19 = arith.constant 0 : index
    %c0_20 = arith.constant 0 : index
    %c0_21 = arith.constant 0 : index
    %37 = vector.load %arg6[%c0_19, %c0_20, %c0_21] : memref<2x8x4xf32, #tpu.memory_space<vmem>>, vector<2x8x4xf32>
    %38 = vector.shape_cast %36 : vector<1x4xf32> to vector<1x1x4xf32>
    %39 = vector.broadcast %38 : vector<1x1x4xf32> to vector<2x8x4xf32>
    %40 = arith.mulf %37, %39 : vector<2x8x4xf32>
    %cst_22 = arith.constant dense<0.000000e+00> : vector<2x8xf32>
    %41 = vector.multi_reduction <add>, %40, %cst_22 [2] : vector<2x8x4xf32> to vector<2x8xf32>
    %c0_23 = arith.constant 0 : index
    %c0_24 = arith.constant 0 : index
    %42 = vector.load %arg7[%c0_23, %c0_24] : memref<2x8xf32, #tpu.memory_space<vmem>>, vector<2x8xf32>
    %43 = arith.mulf %41, %42 : vector<2x8xf32>
    %44 = vector.shape_cast %43 : vector<2x8xf32> to vector<2x8x1xf32>
    %45 = vector.broadcast %44 : vector<2x8x1xf32> to vector<2x8x32xf32>
    %46 = arith.mulf %45, %0 : vector<2x8x32xf32>
    %cst_25 = arith.constant dense<0.000000e+00> : vector<2x32xf32>
    %47 = vector.multi_reduction <add>, %46, %cst_25 [1] : vector<2x8x32xf32> to vector<2x32xf32>
    %cst_26 = arith.constant dense<0.000000e+00> : vector<2x4xf32>
    %48 = vector.multi_reduction <add>, %37, %cst_26 [1] : vector<2x8x4xf32> to vector<2x4xf32>
    %cst_27 = arith.constant 1.000000e+00 : f32
    %49 = vector.broadcast %cst_27 : f32 to vector<2x4xf32>
    %50 = arith.cmpf ogt, %48, %49 : vector<2x4xf32>
    %cst_28 = arith.constant 1.000000e+00 : f32
    %cst_29 = arith.constant 0.000000e+00 : f32
    %51 = vector.broadcast %cst_28 : f32 to vector<2x4xf32>
    %52 = vector.broadcast %cst_29 : f32 to vector<2x4xf32>
    %53 = arith.select %50, %51, %52 : vector<2x4xi1>, vector<2x4xf32>
    %cst_30 = arith.constant dense<0.000000e+00> : vector<2xf32>
    %54 = vector.multi_reduction <add>, %53, %cst_30 [1] : vector<2x4xf32> to vector<2xf32>
    %55 = vector.shape_cast %54 : vector<2xf32> to vector<2x1xf32>
    %56 = tpu.reciprocal %55 : vector<2x1xf32> -> vector<2x1xf32>
    %57 = vector.broadcast %56 : vector<2x1xf32> to vector<2x32xf32>
    %58 = arith.mulf %47, %57 : vector<2x32xf32>
    %c0_31 = arith.constant 0 : index
    %c0_32 = arith.constant 0 : index
    %59 = vector.load %arg8[%c0_31, %c0_32] : memref<2x32xf32, #tpu.memory_space<vmem>>, vector<2x32xf32>
    tpu.vector_store %arg8[%c0_31, %c0_32], %58 {strides = array<i32>} : memref<2x32xf32, #tpu.memory_space<vmem>>, vector<2x32xf32>,
    return
  }
}

</mosaic_0001>

<bundles_post_ra>
// kernel: tpu_custom_call.1
= control target key start
LH: loop header
LB: loop body
LE: loop exit
PB: predicated region body
PF: predicated region fallthrough
CT: control target
= control target key end

     0   :  { %s448_s0 = inlined_call_operand.vmem [shape: f32[2,8,32], index: 0, kind: input, shape index: {}]   ;;  %s449_s1 = inlined_call_operand.vmem [shape: f32[8,32], index: 1, kind: input, shape index: {}]   ;;  %s450_s2 = inlined_call_operand.vmem [shape: f32[8,4], index: 2, kind: input, shape index: {}]   ;;  %s451_s3 = inlined_call_operand.<no memory space> [shape: f32[1,1], index: 3, kind: input, shape index: {}]   ;;  %s452_s4 = inlined_call_operand.vmem [shape: f32[2,4], index: 4, kind: input, shape index: {}]   ;;  %s453_s5 = inlined_call_operand.vmem [shape: f32[2,4], index: 5, kind: input, shape index: {}]   ;;  %s454_s6 = inlined_call_operand.vmem [shape: f32[2,8,4], index: 6, kind: input, shape index: {}]   ;;  %s455_s7 = inlined_call_operand.vmem [shape: f32[2,8], index: 7, kind: input, shape index: {}]   ;;  %s456_s8 = inlined_call_operand.hbm [shape: f32[2,32], index: 8, kind: output, shape index: {}]  }
   0x1   :  { %v13_v0 = vstv %s451_s3 }
   0x2   :  { %14 = vst [vmem:[#allocation2] sm:$0x1] %v13_v0 }
   0x3   :  { %v386_v1 = vld [vmem:[%s448_s0] sm:$0xff]  ;;  %vm37_vm0 = vcmask 261120   ;;  %v394_v3 = vld [vmem:[%s448_s0 + $0x8] sm:$0xff] }
   0x4   :  { %v34_v2 = vld [vmem:[%s449_s1] sm:$0xff] }
   0x5   :  { %v35_v4 = vmul.f32 %v34_v2, %v386_v1  ;;  %v36_v5 = vmul.f32 %v34_v2, %v394_v3 }
   0x6   :  { %15 = vsyncpa [#allocation4], 0  ;;  %v44_v8 = vld [vmem:[%s450_s2] sm:$0xff]  ;;  %v331_v9 = vmov 0.0   ;;  %vm332_vm1 = vmmov 0   ;;  %v333_v11 = vmov 0   ;;  %v57_v12 = vlaneseq }
   0x7   :  { %v38_v6 = vsel %vm37_vm0, %v35_v4, 0.0  ;;  %v41_v7 = vsel %vm37_vm0, %v36_v5, 0.0  ;;  %284 = vmatprep.subr.mxu0 %v331_v9  ;;  %286 = vmatprep.mubr.msk.f32.mxu0 %vm332_vm1, %v331_v9  ;;  %vm67_vm2 = vcmask 1041409   ;;  %vm69_vm3 = vcmask 64512   ;;  %v181_v21 = vld [vmem:[%s455_s7] sm:$0x3] }
   0x8   :  { %39 = vadd.xlane.f32.xlu0 %v38_v6  ;;  %285 = vmatpush3.msra.mxu0 %v44_v8  ;;  %v58_v13 = vand.u32 127, %v57_v12  ;;  %v405_v14 = vshrl.u32 %v57_v12, 7  ;;  %v148_v33 = vld [vmem:[%s452_s4] sm:$0x3]  ;;  %vm162_vm4 = vcmask 25600   ;;  %v171_v54 = vld [vmem:[%s454_s6 + $0x8] sm:$0xff] }
   0x9   :  { %v280_v10 = vld [vmem:[#allocation2] ss:$0 sm:$0xff]  ;;  %293 = vset.pattern.permute.xlu1 %v333_v11  ;;  %294 = vset.pattern.permute.xlu0 %v333_v11  ;;  %vm174_vm5 = vcmask 31744   ;;  %vm264_vm8 = vcmask 254976  }
   0xa   :  { %52 = vperm.xlu1 %293, %v280_v10   ;;  %v61_v16 = vsub.s32 %v58_v13, %v405_v14  ;;  %v192_v22 = vsub.s32 1, %v405_v14  ;;  %v150_v34 = vld [vmem:[%s453_s5] sm:$0x3]  ;;  %v234_v61 = vsel %vm174_vm5, %v171_v54, 0.0  ;;  %v185_v63 = vsub.s32 0, %v405_v14 }
   0xb   :  { %v170_v55 = vld [vmem:[%s454_s6] sm:$0xff]  ;;  %v235_v0 = vrot.slane %v234_v61, 4  ;;  %s334_s6 = smov [#allocation3]  }
   0xc   :  { %42 = vadd.xlane.f32.xlu0 %v41_v7  ;;  %v193_v23 = vrot.slane %v181_v21, %v192_v22  ;;  %v227_v62 = vsel %vm174_vm5, %v170_v55, 0.0  ;;  %v186_v4 = vrot.slane %v181_v21, %v185_v63  ;;  %s272_s18 = sshll.u32 %s334_s6, 4  ;;  %s273_s18 = int_to_ptr.vmem [resolvable:$true] %s272_s18 }
   0xd   :  { %v228_v2 = vrot.slane %v227_v62, 4  ;;  %v236_v5 = vadd.f32 %v235_v0, %v234_v61  ;;  %s307_s19 = scalar_lea.vmem %s273_s18, 32  ;;  %p312_p1 = scmp.lt.s32.totalorder %s273_s18, %s273_s18 }
   0xe   :  { %p308_p0 = scmp.ne.s32.totalorder %s273_s18, %s307_s19  ;;  %p313_p2 = scmp.lt.s32.totalorder %s307_s19, %s307_s19 }
   0xf   :  { %v229_v6 = vadd.f32 %v228_v2, %v227_v62  ;;  %v237_v7 = vrot.slane %v236_v5, 2 }
  0x10   :  { %p314_p3 = por %p313_p2, %p312_p1 }
  0x11   :  { %v230_v8 = vrot.slane %v229_v6, 2  ;;  %v238_v11 = vadd.f32 %v237_v7, %v236_v5 }
  0x12   :  { %p315_p4 = pnand %p314_p3, %p308_p0 }
  0x13   :  { %v231_v10 = vadd.f32 %v230_v8, %v229_v6  ;;  %v239_v13 = vrot.slane %v238_v11, 1 }
  0x15   :  { %v232_v12 = vrot.slane %v231_v10, 1 }
  0x22   :  { %195 = vbcast.lane.b32.xlu0 %v193_v23, 256 }
  0x89   :  { %v53_v24 = vpop.permute.xlu1 %52 }
  0x95   :  { %v40_v15 = vpop.xlane.xlu0 %39 }
  0x96   :  { %v62_v18 = vrot.slane %v40_v15, %v61_v16  ;;  %v233_v15 = vadd.f32 %v232_v12, %v231_v10 }
  0x98   :  { %vm241_vm6 = vcmp.gt.f32.partialorder %v233_v15, 1.0 }
  0x99   :  { %v43_v17 = vpop.xlane.xlu0 %42 }
  0x9a   :  { %v66_v19 = vrot.slane %v43_v17, %v61_v16  ;;  %v240_v16 = vadd.f32 %v239_v13, %v238_v11  ;;  %v243_v17 = vsel %vm241_vm6, 1.0, %v331_v9 }
  0x9c   :  { %v68_v20 = vsel %vm67_vm2, %v66_v19, %v62_v18  ;;  %vm242_vm7 = vcmp.gt.f32.partialorder %v240_v16, 1.0 }
  0x9d   :  { %287 = vmatmul.mubr.msk.f32.vlgmr.msra.gmra.mrb[0].mxu0 %vm69_vm3, %v68_v20  ;;  %v244_v14 = vsel %vm242_vm7, 1.0, %v331_v9  ;;  %v196_v20 = vpop.permute.xlu0 %195 }
  0x9e   :  { %v247_v18 = vsel %vm67_vm2, %v244_v14, %v243_v17 }
  0x9f   :  { %v249_v19 = vsel %vm162_vm4, %v247_v18, 0.0 }
 0x170   :  { %v138_v25 = vpop.f32.mrb[0].mxu0 }
 0x171   :  { %v139_v26 = vadd.f32 %v138_v25, %v53_v24  ;;  %v288_v27 = vpop.f32.mrb[1].mxu0 }
 0x173   :  { %v142_v28 = vsub.f32 0.0, %v139_v26 }
 0x175   :  { %v143_v29 = vmul.f32 1.442695, %v142_v28 }
 0x177   :  { %295 = vpow2.f32 %v143_v29 }
 0x181   :  { %v296_v30 = vpop.eup %295 }
 0x182   :  { %v145_v31 = vadd.f32 1.0, %v296_v30 }
 0x184   :  { %297 = vrcp.f32 %v145_v31 }
 0x18e   :  { %v298_v32 = vpop.eup %297 }
 0x18f   :  { %v147_v35 = vsub.f32 1.0, %v298_v32  ;;  %v151_v37 = vadd.f32 %v298_v32, %v150_v34 }
 0x191   :  { %v149_v36 = vadd.f32 %v148_v33, %v147_v35 }
 0x193   :  { %v152_v38 = vmax.f32 %v149_v36, %v151_v37 }
 0x195   :  { %v153_v39 = vsub.f32 %v149_v36, %v152_v38  ;;  %v156_v40 = vsub.f32 %v151_v37, %v152_v38 }
 0x197   :  { %v154_v41 = vmul.f32 1.442695, %v153_v39  ;;  %v157_v42 = vmul.f32 1.442695, %v156_v40 }
 0x199   :  { %299 = vpow2.f32 %v154_v41 }
 0x19a   :  { %301 = vpow2.f32 %v157_v42 }
 0x1a3   :  { %v300_v43 = vpop.eup %299 }
 0x1a4   :  { %v302_v44 = vpop.eup %301 }
 0x1a5   :  { %v159_v45 = vadd.f32 %v302_v44, %v300_v43 }
 0x1a7   :  { %303 = vrcp.f32 %v159_v45 }
 0x1b1   :  { %v304_v46 = vpop.eup %303 }
 0x1b2   :  { %v161_v47 = vmul.f32 %v304_v46, %v302_v44 }
 0x1b4   :  { %v163_v48 = vsel %vm162_vm4, %v161_v47, 0.0 }
 0x1b5   :  { %v164_v49 = vrot.slane %v163_v48, 4 }
 0x1b7   :  { %v165_v50 = vadd.f32 %v164_v49, %v163_v48 }
 0x1b9   :  { %v166_v51 = vrot.slane %v165_v50, 2 }
 0x1bb   :  { %v167_v52 = vadd.f32 %v166_v51, %v165_v50 }
 0x1bd   :  { %v168_v53 = vrot.slane %v167_v52, 1 }
 0x1bf   :  { %v169_v56 = vadd.f32 %v168_v53, %v167_v52 }
 0x1c1   :  { %v173_v57 = vmul.f32 %v171_v54, %v169_v56  ;;  %v172_v58 = vmul.f32 %v170_v55, %v169_v56 }
 0x1c3   :  { %v178_v59 = vsel %vm174_vm5, %v173_v57, 0.0  ;;  %v175_v60 = vsel %vm174_vm5, %v172_v58, 0.0 }
 0x1c4   :  { %179 = vadd.xlane.f32.xlu1 %v178_v59  ;;  %176 = vadd.xlane.f32.xlu0 %v175_v60 }
 0x1da   :  { %188 = vbcast.lane.b32.xlu0 %v186_v4, 256 }
 0x1f9   :  { %250 = vadd.xlane.f32.xlu0 %v249_v19 }
 0x251   :  { %v180_v21 = vpop.xlane.xlu1 %179  ;;  %v177_v22 = vpop.xlane.xlu0 %176 }
 0x252   :  { %v200_v23 = vmul.f32 %v196_v20, %v180_v21 }
 0x254   :  { %208 = vperm.xlu1 %293, %v200_v23  }
 0x255   :  { %v189_v24 = vpop.permute.xlu0 %188 }
 0x256   :  { %v199_v25 = vmul.f32 %v189_v24, %v177_v22 }
 0x258   :  { %203 = vperm.xlu1 %293, %v199_v25  }
 0x286   :  { %v251_v26 = vpop.xlane.xlu0 %250 }
 0x287   :  { %305 = vrcp.f32 %v251_v26 }
 0x291   :  { %v306_v36 = vpop.eup %305 }
 0x292   :  { %v254_v41 = vrot.slane %v306_v36, 1 }
 0x2d3   :  { %v209_v27 = vpop.permute.xlu1 %208 }
 0x2d4   :  { %v212_v28 = vmul.f32 %v209_v27, %v394_v3 }
 0x2d6   :  { %v220_v9 = vsel %vm37_vm0, %v212_v28, 0.0 }
 0x2d7   :  { %v221_v29 = vrot.slane %v220_v9, 4  ;;  %v204_v30 = vpop.permute.xlu1 %203 }
 0x2d8   :  { %v211_v31 = vmul.f32 %v204_v30, %v386_v1 }
 0x2d9   :  { %v222_v32 = vadd.f32 %v221_v29, %v220_v9 }
 0x2da   :  { %v213_v33 = vsel %vm37_vm0, %v211_v31, 0.0 }
 0x2db   :  { %v223_v34 = vrot.slane %v222_v32, 2  ;;  %v214_v35 = vrot.slane %v213_v33, 4 }
 0x2dd   :  { %v224_v37 = vadd.f32 %v223_v34, %v222_v32  ;;  %v215_v38 = vadd.f32 %v214_v35, %v213_v33 }
 0x2df   :  { %v225_v39 = vrot.slane %v224_v37, 1  ;;  %v216_v40 = vrot.slane %v215_v38, 2 }
 0x2e1   :  { %v226_v42 = vadd.f32 %v225_v39, %v224_v37  ;;  %v217_v43 = vadd.f32 %v216_v40, %v215_v38 }
 0x2e3   :  { %v218_v3 = vrot.slane %v217_v43, 1  ;;  %v258_v44 = vmul.f32 %v254_v41, %v226_v42 }
 0x2e5   :  { %v219_v45 = vadd.f32 %v218_v3, %v217_v43  ;;  %v261_v1 = vrot.slane %v258_v44, 7 }
 0x2e7   :  { %v257_v46 = vmul.f32 %v306_v36, %v219_v45 }
 0x2e9   :  { %v262_v47 = vsel %vm67_vm2, %v261_v1, %v257_v46 }
 0x2ea   :  { %265 = vst.msk [vmem:[#allocation3] sm:$0x3] %vm264_vm8, %v262_v47 }
 0x2eb   :  { %318 = shalt.err (!%p315_p4)
}
 0x2ec   :  { %s319_s22 = scalar_lea.hbm %s456_s8, 32 }
 0x2ed   :  { %p320_p5 = scmp.ne.s32.totalorder %s456_s8, %s319_s22  ;;  %p323_p6 = scmp.lt.u32.totalorder %s319_s22, %s456_s8 }
 0x2ef   :  { %p325_p7 = pnand %p323_p6, %p320_p5 }
 0x2f1   :  { %328 = shalt.err (!%p325_p7)
}
 0x2f2   :  { %275 = dma.vmem_to_hbm [thread:$0]  %s273_s18, 32, %s456_s8, [#allocation4]  }
 0x2f3   :  { %329 = dma.done.wait [#allocation4], 32  }
 0x2f4   :  { %330 = vsyncadd [#allocation4], 4294967264 }
 0x2f5   :  { %279 = vsyncpa [#allocation4], 1 }

</bundles_post_ra>
